<compile_context>
chip_gen: v6e
topology: v6e:2x2x1
jax: 0.10.0
libtpu: 0.0.40
codegen_flags: <defaults>
</compile_context>

<pallas_src>
import functools

import jax
import jax.numpy as jnp
from jax.experimental import pallas as pl
from jax.experimental.pallas import tpu as pltpu


def _label_smoothing_kernel(x_ref, t_ref, loss_ref, *, confidence, smoothing, inv_c):
    x = x_ref[...]                                   # (tm, C), native dtype
    t = t_ref[...]                                   # (tm, C), native dtype

    # Numerically stable logZ along the class (lane) axis.
    m = jnp.max(x, axis=-1, keepdims=True)                                   # (tm, 1)
    e = jnp.exp((x - m).astype(jnp.float32))         # only full-width f32 temp
    lse = jnp.log(jnp.sum(e, axis=-1, keepdims=True))                        # (tm, 1)
    logz = m.astype(jnp.float32) + lse                                       # (tm, 1)

    # Row reductions with f32 accumulation (no full-tile upcast copies).
    sx = jnp.sum(x, axis=-1, keepdims=True, dtype=jnp.float32)               # (tm, 1)
    st = jnp.sum(t, axis=-1, keepdims=True, dtype=jnp.float32)               # (tm, 1)
    sxt = jnp.sum(x.astype(jnp.float32) * t.astype(jnp.float32),
                  axis=-1, keepdims=True)                                    # (tm, 1)

    # logprobs = x - logZ (never materialized):
    #   nll    = -sum(logprobs * t) = logZ * sum(t) - sum(x * t)
    #   smooth = -mean(logprobs)    = logZ - mean(x)
    nll = logz * st - sxt
    smooth = logz - sx * inv_c

    loss_ref[...] = confidence * nll + smoothing * smooth                    # (tm, 1)


def _round_up(a, b):
    return (a + b - 1) // b * b


def _vmem_capacity_bytes():
    try:
        info = pltpu.get_tpu_info()
        cap = getattr(info, "vmem_capacity_bytes", None)
        if cap:
            return int(cap)
    except Exception:
        pass
    return 64 * 1024 * 1024  # conservative: v7x per-TensorCore VMEM


def label_smoothing_loss(x, target, smoothing=0.1, tile_rows=None):
    """Training-mode LabelSmoothing forward. x, target: [N, C]. Returns scalar f32."""
    confidence = 1.0 - float(smoothing)
    n, c = x.shape
    assert target.shape == (n, c), (target.shape, (n, c))

    x_item = jnp.dtype(x.dtype).itemsize
    t_item = jnp.dtype(target.dtype).itemsize
    # Sublane alignment for the row axis: f32 -> 8, bf16/f16 -> 16, int8/fp8 -> 32.
    row_mult = {4: 8, 2: 16, 1: 32}.get(min(x_item, t_item), 8)

    # VMEM budget: ~5/8 of physical capacity leaves Mosaic scratch headroom
    # (≈40 MiB on v7x's 64 MiB per-TC VMEM, ≈80 MiB on v5e/v6e's 128 MiB).
    vmem_capacity = _vmem_capacity_bytes()
    vmem_limit_bytes = min(vmem_capacity * 5 // 8, 100 * 1024 * 1024)

    # Per-row bytes: double-buffered x and t input tiles, one full-width f32
    # intermediate (+ one spare width of slack for compiler temporaries /
    # cast fusion), double-buffered (rows, 1) output lane-padded to 128.
    per_row_bytes = 2 * c * (x_item + t_item) + 2 * c * 4 + 2 * 128 * 4

    if tile_rows is None:
        tile_rows = (vmem_limit_bytes // per_row_bytes) // row_mult * row_mult
        tile_rows = int(max(row_mult, min(tile_rows, 8192)))
        # Keep >= ~4 grid steps (when n allows) so v7x's two TensorCores both
        # get work under dimension_semantics=("parallel",).
        steps_cap = max(row_mult, _round_up(pl.cdiv(n, 4), row_mult))
        tile_rows = min(tile_rows, steps_cap)
    # Never use a tile larger than the (row-aligned) input; keep 8/16/32 alignment.
    tile_rows = min(int(tile_rows), _round_up(n, row_mult))
    tile_rows = max(row_mult, tile_rows // row_mult * row_mult)

    grid = (pl.cdiv(n, tile_rows),)

    kernel = functools.partial(
        _label_smoothing_kernel,
        confidence=float(confidence),
        smoothing=float(smoothing),
        inv_c=1.0 / float(c),
    )

    cost = pl.CostEstimate(
        flops=6 * n * c,
        transcendentals=n * c,
        bytes_accessed=n * c * (x_item + t_item) + n * 4,
    )

    # No padding: the last (ragged) block's extra rows are never stored
    # (Pallas masks the out-of-bounds part of the output block), and all
    # per-row math is row-local, so garbage rows cannot leak into the result.
    per_row_loss = pl.pallas_call(
        kernel,
        out_shape=jax.ShapeDtypeStruct((n, 1), jnp.float32),
        grid_spec=pltpu.PrefetchScalarGridSpec(
            num_scalar_prefetch=0,
            grid=grid,
            in_specs=[
                pl.BlockSpec((tile_rows, c), lambda i: (i, 0)),
                pl.BlockSpec((tile_rows, c), lambda i: (i, 0)),
            ],
            out_specs=pl.BlockSpec((tile_rows, 1), lambda i: (i, 0)),
        ),
        compiler_params=pltpu.CompilerParams(
            dimension_semantics=("parallel",),  # rows independent -> megacore-friendly
            vmem_limit_bytes=int(vmem_limit_bytes),
        ),
        cost_estimate=cost,
    )(x, target)

    # Final mean over rows, done by XLA (tiny [N,1] array).
    return jnp.mean(per_row_loss[:, 0])


if __name__ == "__main__":
    key = jax.random.PRNGKey(0)
    k_x, k_t = jax.random.split(key)

    N, C = 16, 32  # small: 16 samples, 32 classes
    x = jax.random.normal(k_x, (N, C), dtype=jnp.float32)
    # one-hot float targets (what the PyTorch training path expects)
    labels = jax.random.randint(k_t, (N,), 0, C)
    target = jax.nn.one_hot(labels, C, dtype=jnp.float32)

    loss = jax.block_until_ready(label_smoothing_loss(x, target, smoothing=0.1))

    # pure-JAX reference check
    logprobs = jax.nn.log_softmax(x, axis=-1)
    nll = -(logprobs * target).sum(-1)
    smooth = -logprobs.mean(-1)
    ref = (0.9 * nll + 0.1 * smooth).mean()

    assert jnp.allclose(loss, ref, atol=1e-5, rtol=1e-5), (loss, ref)
    print("KERNEL_OK")
</pallas_src>

<mosaic_0001>
module attributes {stable_mosaic.version = 11 : i64} {
  func.func @_label_smoothing_kernel(%arg0: i32, %arg1: memref<8x32xf32, #tpu.memory_space<vmem>>, %arg2: memref<8x32xf32, #tpu.memory_space<vmem>>, %arg3: memref<8x1xf32, #tpu.memory_space<vmem>>) attributes {dimension_semantics = [#tpu.dimension_semantics<parallel>], iteration_bounds = array<i64: 2>, scalar_prefetch = 0 : i64, scratch_operands = 0 : i64, tpu.core_type = #tpu.core_type<tc>, window_params = [{transform_indices = @transform_0, window_bounds = array<i64: 8, 32>}, {transform_indices = @transform_1, window_bounds = array<i64: 8, 32>}, {transform_indices = @transform_2, window_bounds = array<i64: 8, 1>}]} {
    %c0 = arith.constant 0 : index
    %c0_0 = arith.constant 0 : index
    %0 = vector.load %arg1[%c0, %c0_0] : memref<8x32xf32, #tpu.memory_space<vmem>>, vector<8x32xf32>
    %c0_1 = arith.constant 0 : index
    %c0_2 = arith.constant 0 : index
    %1 = vector.load %arg2[%c0_1, %c0_2] : memref<8x32xf32, #tpu.memory_space<vmem>>, vector<8x32xf32>
    %cst = arith.constant dense<0xFF800000> : vector<8xf32>
    %2 = vector.multi_reduction <maximumf>, %0, %cst [1] : vector<8x32xf32> to vector<8xf32>
    %3 = vector.shape_cast %2 : vector<8xf32> to vector<8x1xf32>
    %4 = vector.broadcast %3 : vector<8x1xf32> to vector<8x32xf32>
    %5 = arith.subf %0, %4 : vector<8x32xf32>
    %6 = math.exp %5 : vector<8x32xf32>
    %cst_3 = arith.constant dense<0.000000e+00> : vector<8xf32>
    %7 = vector.multi_reduction <add>, %6, %cst_3 [1] : vector<8x32xf32> to vector<8xf32>
    %8 = vector.shape_cast %7 : vector<8xf32> to vector<8x1xf32>
    %9 = math.log %8 : vector<8x1xf32>
    %10 = arith.addf %3, %9 : vector<8x1xf32>
    %cst_4 = arith.constant dense<0.000000e+00> : vector<8xf32>
    %11 = vector.multi_reduction <add>, %0, %cst_4 [1] : vector<8x32xf32> to vector<8xf32>
    %12 = vector.shape_cast %11 : vector<8xf32> to vector<8x1xf32>
    %cst_5 = arith.constant dense<0.000000e+00> : vector<8xf32>
    %13 = vector.multi_reduction <add>, %1, %cst_5 [1] : vector<8x32xf32> to vector<8xf32>
    %14 = vector.shape_cast %13 : vector<8xf32> to vector<8x1xf32>
    %15 = arith.mulf %0, %1 : vector<8x32xf32>
    %cst_6 = arith.constant dense<0.000000e+00> : vector<8xf32>
    %16 = vector.multi_reduction <add>, %15, %cst_6 [1] : vector<8x32xf32> to vector<8xf32>
    %17 = vector.shape_cast %16 : vector<8xf32> to vector<8x1xf32>
    %18 = arith.mulf %10, %14 : vector<8x1xf32>
    %19 = arith.subf %18, %17 : vector<8x1xf32>
    %cst_7 = arith.constant 3.125000e-02 : f32
    %20 = vector.broadcast %cst_7 : f32 to vector<8x1xf32>
    %21 = arith.mulf %12, %20 : vector<8x1xf32>
    %22 = arith.subf %10, %21 : vector<8x1xf32>
    %cst_8 = arith.constant 0.899999976 : f32
    %23 = vector.broadcast %cst_8 : f32 to vector<8x1xf32>
    %24 = arith.mulf %23, %19 : vector<8x1xf32>
    %cst_9 = arith.constant 1.000000e-01 : f32
    %25 = vector.broadcast %cst_9 : f32 to vector<8x1xf32>
    %26 = arith.mulf %25, %22 : vector<8x1xf32>
    %27 = arith.addf %24, %26 : vector<8x1xf32>
    %c0_10 = arith.constant 0 : index
    %c0_11 = arith.constant 0 : index
    %28 = vector.load %arg3[%c0_10, %c0_11] : memref<8x1xf32, #tpu.memory_space<vmem>>, vector<8x1xf32>
    tpu.vector_store %arg3[%c0_10, %c0_11], %27 {strides = array<i32>} : memref<8x1xf32, #tpu.memory_space<vmem>>, vector<8x1xf32>,
    return
  }
  func.func @transform_0(%arg0: i32) -> (i32, i32) {
    %c0_i32 = arith.constant 0 : i32
    %c0_i32_0 = arith.constant 0 : i32
    return %arg0, %c0_i32 : i32, i32
  }
  func.func @transform_1(%arg0: i32) -> (i32, i32) {
    %c0_i32 = arith.constant 0 : i32
    %c0_i32_0 = arith.constant 0 : i32
    return %arg0, %c0_i32 : i32, i32
  }
  func.func @transform_2(%arg0: i32) -> (i32, i32) {
    %c0_i32 = arith.constant 0 : i32
    %c0_i32_0 = arith.constant 0 : i32
    return %arg0, %c0_i32 : i32, i32
  }
}

</mosaic_0001>

<bundles_post_ra>
// kernel: tpu_custom_call.1
= control target key start
LH: loop header
LB: loop body
LE: loop exit
PB: predicated region body
PF: predicated region fallthrough
CT: control target
= control target key end

     0   :  { %7 = vsyncpa [#allocation3], 0  ;;  %s649_s0 = inlined_call_operand.hbm [shape: f32[16,32], index: 0, kind: input, shape index: {}]   ;;  %s650_s1 = inlined_call_operand.hbm [shape: f32[16,32], index: 1, kind: input, shape index: {}]   ;;  %s651_s2 = inlined_call_operand.vmem [shape: f32[16,1], index: 2, kind: output, shape index: {}]  }
   0x1   :  { %9 = vsyncpa [#allocation3 + $0x1], 0 }
   0x2   :  { %10 = vsyncpa [#allocation5], 0 }
   0x3   :  { %12 = vsyncpa [#allocation5 + $0x1], 0  ;;  %s492_s9 = smov 0   ;;  %s494_s10 = smov 0  }
   0x4   :  { %s496_s11 = smov 0   ;;  %s498_s12 = smov 0  }
   0x5 LB: > { %s511_s13 = sadd.s32 4294967295, %s473_s12   ;;  %s514_s14 = sadd.s32 1, %s473_s12   ;;  %s473_s12 = sphi %s498_s12, %s663_s12   ;;  %s469_s11 = sphi %s496_s11, %s662_s11   ;;  %s465_s10 = sphi %s494_s10, %s661_s10   ;;  %s461_s9 = sphi %s492_s9, %s660_s9  }
   0x6   : > { %s22_s15 = ssub.s32 %s473_s12, %s514_s14  ;;  %s25_s16 = sadd.s32 1, %s469_s11 }
   0x7   : > { %p23_p0 = scmp.eq.s32.totalorder %s22_s15, 0  ;;  %p32_p1 = scmp.ne.s32.totalorder %s469_s11, %s465_s10 }
   0x8   : > { %p33_p2 = scmp.eq.s32.totalorder %s473_s12, 0  ;;  %p38_p3 = scmp.ne.s32.totalorder %s465_s10, %s461_s9 }
   0x9   : > { %s524_s17 = scalar_select %p23_p0, %s469_s11, %s25_s16  }
   0xa   : > { %p34_p4 = por %p33_p2, %p32_p1  ;;  %p39_p5 = scmp.eq.s32.totalorder %s511_s13, 0 }
   0xb   : > { %p342_p6 = scmp.lt.s32.totalorder %s473_s12, 2  ;;  %s533_s19 = sand.u32 1, %s469_s11  }
   0xc   : > { %p528_p7 = por %p39_p5, %p38_p3  ;;  %s321_s20 = sshll.u32 %s533_s19, 3 }
   0xd   : > { %s322_s21 = sshll.u32 %s473_s12, 7  ;;  %s118_s25 = scalar_lea.vmem [#allocation2], %s321_s20 }
   0xe   : > { %s653_s18 = scalar_select %p528_p7, 1, 0 }
   0xf   : > { %s542_s24 = scalar_lea.hbm %s649_s0, %s322_s21  ;;  %s125_s26 = sshll.u32 %s118_s25, 4  ;;  %s546_s26 = int_to_ptr.vmem [resolvable:$true] %s125_s26 }
  0x10   : > { %p548_p8 = pnand %p342_p6, %p34_p4  ;;  %s115_s28 = scalar_lea.sflag [#allocation3], %s533_s19 }
  0x11   : > { %s379_s29 = scalar_lea.hbm %s542_s24, 128  ;;  %s384_s4 = scalar_lea.hbm %s649_s0, 256 }
  0x12   : > { %p380_p11 = scmp.ne.s32.totalorder %s542_s24, %s379_s29  ;;  %p381_p12 = pneg %p548_p8 }
  0x13   : > { %p385_p1 = scmp.lt.s32.totalorder %s542_s24, %s649_s0  ;;  %p386_p2 = scmp.lt.s32.totalorder %s384_s4, %s379_s29 }
  0x14   : > { %p382_p13 = pnand %p381_p12, %p380_p11 }
  0x15   : > { %p387_p3 = por %p386_p2, %p385_p1 }
  0x16   : > { %p383_p0 = pneg %p382_p13 }
  0x18   : > { %p388_p4 = pnand %p387_p3, %p383_p0 }
  0x1a   : > { %391 = shalt.err (!%p388_p4)
}
  0x1b   : > { %s392_s7 = scalar_lea.vmem %s546_s26, 128  ;;  %s475_s8 = smov [#allocation2]  }
  0x1c   : > { %p393_p5 = scmp.ne.s32.totalorder %s546_s26, %s392_s7  ;;  %s397_s9 = sshll.u32 %s475_s8, 4  ;;  %s398_s9 = int_to_ptr.vmem [resolvable:$false] %s397_s9 }
  0x1d   : > { %s399_s15 = scalar_lea.vmem %s398_s9, 256  ;;  %p400_p13 = scmp.lt.s32.totalorder %s546_s26, %s398_s9 }
  0x1e   : > { %p395_p6 = pnand %p393_p5, %p381_p12  ;;  %p401_p9 = scmp.lt.s32.totalorder %s399_s15, %s392_s7 }
  0x20   : > { %p396_p11 = pneg %p395_p6  ;;  %p402_p10 = por %p401_p9, %p400_p13 }
  0x22   : > { %p403_p1 = pnand %p402_p10, %p396_p11 }
  0x24   : > { %406 = shalt.err (!%p403_p1)
}
  0x25   : > { %338 = dma.hbm_to_vmem [thread:$0]  (!%p548_p8), %s542_s24, 128, %s546_s26, %s115_s28  }
  0x26   : > { %p655_p0 = scmp.lt.s32.totalorder %s473_s12, 3  ;;  %p656_p2 = scmp.ge.s32.totalorder %s473_s12, 1 }
  0x27   : > { %s592_s25 = scalar_lea.hbm %s650_s1, %s322_s21  ;;  %s136_s29 = scalar_lea.vmem [#allocation4], %s321_s20 }
  0x28   : > { %p583_p3 = pnand %p656_p2, %p655_p0  ;;  %s143_s30 = sshll.u32 %s136_s29, 4  ;;  %s144_s30 = int_to_ptr.vmem [resolvable:$true] %s143_s30 }
  0x29   : > { %s133_s24 = scalar_lea.sflag [#allocation5], %s533_s19  ;;  %s407_s26 = scalar_lea.hbm %s592_s25, 128 }
  0x2a   : > { %s657_s16 = scalar_select %p583_p3, 1, 0 }
  0x2b   : > { %p408_p9 = scmp.ne.s32.totalorder %s592_s25, %s407_s26  ;;  %s412_s3 = scalar_lea.hbm %s650_s1, 256 }
  0x2c   : > { %p413_p5 = scmp.lt.s32.totalorder %s592_s25, %s650_s1  ;;  %p414_p6 = scmp.lt.s32.totalorder %s412_s3, %s407_s26 }
  0x2d   : > { %p410_p10 = pnand %p408_p9, %p381_p12 }
  0x2e   : > { %p415_p11 = por %p414_p6, %p413_p5 }
  0x2f   : > { %p411_p4 = pneg %p410_p10 }
  0x31   : > { %p416_p13 = pnand %p415_p11, %p411_p4 }
  0x33   : > { %419 = shalt.err (!%p416_p13)
}
  0x34   : > { %s420_s20 = scalar_lea.vmem %s144_s30, 128  ;;  %s476_s19 = smov [#allocation4]  }
  0x35   : > { %p421_p1 = scmp.ne.s32.totalorder %s144_s30, %s420_s20  ;;  %s425_s5 = sshll.u32 %s476_s19, 4  ;;  %s426_s5 = int_to_ptr.vmem [resolvable:$false] %s425_s5 }
  0x36   : > { %s427_s6 = scalar_lea.vmem %s426_s5, 256  ;;  %p428_p9 = scmp.lt.s32.totalorder %s144_s30, %s426_s5 }
  0x37   : > { %p423_p0 = pnand %p421_p1, %p381_p12  ;;  %p429_p10 = scmp.lt.s32.totalorder %s427_s6, %s420_s20 }
  0x39   : > { %p424_p2 = pneg %p423_p0  ;;  %p430_p7 = por %p429_p10, %p428_p9 }
  0x3b   : > { %p431_p3 = pnand %p430_p7, %p424_p2 }
  0x3d   : > { %434 = shalt.err (!%p431_p3)
}
  0x3e   : > { %341 = dma.hbm_to_vmem [thread:$0]  (!%p548_p8), %s592_s25, 128, %s144_s30, %s133_s24  }
  0x3f   : > { %p658_p4 = scmp.ne.s32.totalorder %s657_s16, 0 }
  0x40   : > { %s154_s7 = sand.u32 (!%p658_p4), 1, %s465_s10   ;;  %p659_p12 = scmp.ne.s32.totalorder (!%p658_p4), %s653_s18, 0 }
  0x41   : > { %152 = sbr.rel (%p658_p4) target bundleno = 397 (0x18d), region = 28  ;;  %s326_s8 = sshll.u32 (!%p658_p4), %s154_s7, 3 }
  0x42   : > { %s155_s9 = scalar_lea.sflag (!%p658_p4), [#allocation3], %s154_s7  ;;  %s158_s15 = scalar_lea.vmem (!%p658_p4), [#allocation2], %s326_s8 }
  0x46   : > { %452 = dma.done.wait (%p659_p12), %s155_s9, 128  }
  0x47   : > { %454 = vsyncadd (%p659_p12), %s155_s9, 4294967168  ;;  %s164_s22 = scalar_lea.sflag [#allocation5], %s154_s7  ;;  %s167_s23 = scalar_lea.vmem [#allocation4], %s326_s8 }
  0x48   : > { %456 = dma.done.wait (%p659_p12), %s164_s22, 128  }
  0x49   : > { %458 = vsyncadd (%p659_p12), %s164_s22, 4294967168  ;;  %vm198_vm0 = vcmask 261120   ;;  %v196_v0 = vld [vmem:[%s158_s15] sm:$0xff]  ;;  %v197_v3 = vld [vmem:[%s167_s23] sm:$0xff]  ;;  %p192_p7 = scmp.lt.s32.totalorder %s511_s13, 1  ;;  %vm228_vm1 = vcmask 7168  }
  0x4a   : > { %v199_v1 = vsel %vm198_vm0, %v196_v0, -inf  ;;  %v211_v2 = vsel %vm198_vm0, %v196_v0, 0.0  ;;  %v214_v4 = vsel %vm198_vm0, %v197_v3, 0.0  ;;  %v217_v8 = vmul.f32 %v197_v3, %v196_v0 }
  0x4b   : > { %200 = vmax.xlane.f32.xlu0 %v199_v1  ;;  %212 = vadd.xlane.f32.xlu1 %v211_v2  ;;  %s665_s13 = smov (!%p192_p7, %s511_s13), 1 }
  0x4c   : > { %v218_v11 = vsel %vm198_vm0, %v217_v8, 0.0  ;;  %s328_s18 = sshll.u32 %s665_s13, 3 }
  0x4d   : > { %s195_s25 = scalar_lea.vmem %s651_s2, %s328_s18 }
  0x4f   : > { %215 = vadd.xlane.f32.xlu1 %v214_v4 }
  0xd4   : > { %v201_v5 = vpop.xlane.xlu0 %200  ;;  %v213_v13 = vpop.xlane.xlu1 %212 }
  0xd5   : > { %v202_v6 = vsub.f32 %v196_v0, %v201_v5  ;;  %v223_v18 = vmul.f32 0.03125, %v213_v13 }
  0xd7   : > { %v203_v7 = vmul.f32 1.442695, %v202_v6 }
  0xd8   : > { %v216_v16 = vpop.xlane.xlu1 %215 }
  0xd9   : > { %375 = vpow2.f32 %v203_v7 }
  0xe6   : > { %v376_v9 = vpop.eup %375 }
  0xe7   : > { %v205_v10 = vsel %vm198_vm0, %v376_v9, 0.0 }
  0xe8   : > { %206 = vadd.xlane.f32.xlu0 %v205_v10 }
  0xec   : > { %219 = vadd.xlane.f32.xlu0 %v218_v11 }
 0x171   : > { %v207_v12 = vpop.xlane.xlu0 %206 }
 0x172   : > { %377 = vlog2.f32 %v207_v12 }
 0x175   : > { %v220_v19 = vpop.xlane.xlu0 %219 }
 0x17f   : > { %v378_v14 = vpop.eup %377 }
 0x180   : > { %v209_v15 = vmul.f32 0.6931472, %v378_v14 }
 0x182   : > { %v210_v17 = vadd.f32 %v209_v15, %v201_v5 }
 0x184   : > { %v224_v20 = vsub.f32 %v210_v17, %v223_v18  ;;  %v221_v21 = vmul.f32 %v216_v16, %v210_v17 }
 0x186   : > { %v222_v22 = vsub.f32 %v221_v21, %v220_v19  ;;  %v226_v23 = vmul.f32 0.1, %v224_v20 }
 0x188   : > { %v225_v24 = vmul.f32 0.9, %v222_v22 }
 0x18a   : > { %v227_v25 = vadd.f32 %v226_v23, %v225_v24 }
 0x18c   : > { %229 = vst.msk [vmem:[%s195_s25] sm:$0xff] %vm228_vm1, %v227_v25 }
 0x18d PF: > { %p15_p8 = scmp.ge.s32.totalorder %s514_s14, 4   ;;  %s660_s9 = smov %s465_s10 }
 0x18e   : > { %s661_s10 = smov %s469_s11  ;;  %s662_s11 = smov %s524_s17 }
 0x18f   : > { %s663_s12 = smov %s514_s14  ;;  %17 = sbr.rel (!%p15_p8) target bundleno = 5 (0x5), region = 81 }
 0x194   :  { %249 = vsyncpa [#allocation3], 1 }
 0x195   :  { %251 = vsyncpa [#allocation3 + $0x1], 1 }
 0x196   :  { %252 = vsyncpa [#allocation5], 1 }
 0x197   :  { %254 = vsyncpa [#allocation5 + $0x1], 1 }

</bundles_post_ra>
